<compile_context>
chip_gen: v7x
topology: tpu7x:2x2x1
jax: 0.10.0
libtpu: 0.0.40
codegen_flags: <defaults>
</compile_context>

<pallas_src>
import functools

import jax
import jax.numpy as jnp
from jax.experimental import pallas as pl
from jax.experimental.pallas import tpu as pltpu


_TARGET_BLOCK_BYTES = 2 << 20        # ~2 MiB blocks (review: raise from 1 MiB)
_FLAT_MAX_PLANE_BYTES = 512 << 10    # flatten only small planes
_VMEM_LIMIT_FLOOR = 16 << 20
_VMEM_LIMIT_CAP = 48 << 20           # stay well inside v7x's 64 MiB physical VMEM


def _round_up(x: int, m: int) -> int:
    return ((x + m - 1) // m) * m


def _native_sublane(itemsize: int) -> int:
    # f32 -> 8 rows / sublane tile, bf16 -> 16, int8/fp8 -> 32.
    return 8 * max(1, 4 // max(itemsize, 1))


def _vmem_limit(block_bytes: int, resident_bytes: int) -> int:
    # in + out, double-buffered, plus resident mask(s) and slack.
    need = 4 * block_bytes + 2 * resident_bytes + (1 << 20)
    return int(min(max(need, _VMEM_LIMIT_FLOOR), _VMEM_LIMIT_CAP))


def _choose_block_rows(n_rows: int, row_bytes: int, sublane: int) -> int:
    """Flattened planes per block: ~2 MiB, sublane-aligned, >=8 grid steps."""
    if n_rows <= sublane:
        return n_rows                       # whole array: block == full dims
    tb = max(1, _TARGET_BLOCK_BYTES // max(row_bytes, 1))
    # Leave at least ~8 grid steps so the "parallel" axis can shard across
    # v7x's two TensorCores (no effect on v5e/v6e).
    cap = _round_up(pl.cdiv(n_rows, 8), sublane)
    tb = min(tb, cap, n_rows)
    tb = max(sublane, (tb // sublane) * sublane)
    return min(tb, n_rows)


def _choose_block_planes(n_planes: int, plane_bytes: int) -> int:
    """Whole (H, W) planes per block for the 3-D path (~2 MiB, >=8 steps)."""
    tb = max(1, _TARGET_BLOCK_BYTES // max(plane_bytes, 1))
    cap = max(1, pl.cdiv(n_planes, 8))
    return max(1, min(tb, cap, n_planes))


# --------------------------------------------------------------------------
# Kernels
# --------------------------------------------------------------------------

def _shift2d_flat_kernel(mask_ref, x_ref, o_ref, *, shift):
    """Block of flattened planes (tb, H*W): one roll + masked select.

    The validity mask (1, H*W) is a constant-index input -> loaded once,
    resident across all grid steps (hoists the lane//W divide chain).
    """
    x = x_ref[...]
    rolled = pltpu.roll(x, shift=shift, axis=1) if shift else x
    zero = jnp.zeros((), dtype=o_ref.dtype)
    o_ref[...] = jnp.where(mask_ref[...] != 0, rolled, zero)


def _shift2d_3d_kernel(x_ref, o_ref, *, vert, horz, H, W, vshift, hshift):
    """Block of whole planes (tb, H, W): lane roll + sublane roll + mask."""
    x = x_ref[...]
    if hshift:
        x = pltpu.roll(x, shift=hshift, axis=2)   # horizontal: lane rotate
    if vshift:
        x = pltpu.roll(x, shift=vshift, axis=1)   # vertical: sublane rotate
    # Divide-free validity mask (broadcast over the tb axis).
    row = jax.lax.broadcasted_iota(jnp.int32, (1, H, W), 1)
    col = jax.lax.broadcasted_iota(jnp.int32, (1, H, W), 2)
    valid = (row >= vert) & (row < H + vert) & (col >= horz) & (col < W + horz)
    zero = jnp.zeros((), dtype=o_ref.dtype)
    o_ref[...] = jnp.where(valid, x, zero)


# --------------------------------------------------------------------------
# Wrapper
# --------------------------------------------------------------------------

def shift2d(x, shift):
    """Pallas implementation of Shift2d.forward.

    Args:
      x: (B, C, H, W) array.
      shift: (vert, horz) tuple of Python ints (static, as in the nn.Module).
    Returns:
      (B, C, H, W) array, same dtype as x.
    """
    vert, horz = int(shift[0]), int(shift[1])
    B, C, H, W = x.shape

    # ---- static fast paths (free wins, zero HBM read for the second one) ----
    if vert == 0 and horz == 0:
        return x
    if abs(vert) >= H or abs(horz) >= W:
        return jnp.zeros_like(x)

    N = B * C
    itemsize = x.dtype.itemsize
    sublane = _native_sublane(itemsize)
    plane_bytes = H * W * itemsize

    if W < 128 and plane_bytes <= _FLAT_MAX_PLANE_BYTES:
        # ------------------------- flat (lane-dense) path -------------------
        L = H * W
        x_flat = x.reshape(N, L)
        tb = _choose_block_rows(N, L * itemsize, sublane)
        grid = (pl.cdiv(N, tb),)

        # Loop-invariant validity mask, computed once in the wrapper.
        lane = jnp.arange(L, dtype=jnp.int32)
        row = lane // W
        col = lane - row * W
        valid = ((row >= vert) & (row < H + vert) &
                 (col >= horz) & (col < W + horz))
        mask = valid.astype(jnp.int32).reshape(1, L)

        shift_flat = (vert * W + horz) % L
        kernel = functools.partial(_shift2d_flat_kernel, shift=shift_flat)
        block_bytes = tb * L * itemsize

        out_flat = pl.pallas_call(
            kernel,
            out_shape=jax.ShapeDtypeStruct((N, L), x.dtype),
            grid_spec=pltpu.PrefetchScalarGridSpec(
                num_scalar_prefetch=0,
                grid=grid,
                in_specs=[
                    pl.BlockSpec((1, L), lambda i: (0, 0)),     # resident mask
                    pl.BlockSpec((tb, L), lambda i: (i, 0)),
                ],
                out_specs=pl.BlockSpec((tb, L), lambda i: (i, 0)),
            ),
            compiler_params=pltpu.CompilerParams(
                dimension_semantics=("parallel",),
                vmem_limit_bytes=_vmem_limit(block_bytes, L * 4),
            ),
            cost_estimate=pl.CostEstimate(
                flops=0, transcendentals=0,
                bytes_accessed=2 * N * L * itemsize,
            ),
        )(mask, x_flat)
        return out_flat.reshape(B, C, H, W)

    # ----------------------------- 3-D (per-plane) path ---------------------
    # Keeps stores lane-dense for W >= 128 and bounds block size for large
    # planes (no more 8 * multi-MiB-row blocks blowing past v7x's 64 MiB VMEM).
    # TODO(synk): for planes > ~6 MiB a further H-tiling of the block would be
    # needed to stay inside the VMEM budget; not required for typical sizes.
    x3 = x.reshape(N, H, W)
    tb = _choose_block_planes(N, plane_bytes)
    grid = (pl.cdiv(N, tb),)
    kernel = functools.partial(
        _shift2d_3d_kernel, vert=vert, horz=horz, H=H, W=W,
        vshift=vert % H, hshift=horz % W)
    block_bytes = tb * plane_bytes

    out3 = pl.pallas_call(
        kernel,
        out_shape=jax.ShapeDtypeStruct((N, H, W), x.dtype),
        grid_spec=pltpu.PrefetchScalarGridSpec(
            num_scalar_prefetch=0,
            grid=grid,
            in_specs=[pl.BlockSpec((tb, H, W), lambda i: (i, 0, 0))],
            out_specs=pl.BlockSpec((tb, H, W), lambda i: (i, 0, 0)),
        ),
        compiler_params=pltpu.CompilerParams(
            dimension_semantics=("parallel",),
            vmem_limit_bytes=_vmem_limit(block_bytes, 0),
        ),
        cost_estimate=pl.CostEstimate(
            flops=0, transcendentals=0,
            bytes_accessed=2 * N * plane_bytes,
        ),
    )(x3)
    return out3.reshape(B, C, H, W)


# --------------------------------------------------------------------------
# Pure-JAX reference (ZeroPad2d + Crop2d, exactly as in the PyTorch module)
# --------------------------------------------------------------------------

def _shift2d_ref(x, shift):
    vert, horz = int(shift[0]), int(shift[1])
    y_a, y_b = (abs(vert), 0) if vert >= 0 else (0, abs(vert))
    x_a, x_b = (abs(horz), 0) if horz >= 0 else (0, abs(horz))
    padded = jnp.pad(x, ((0, 0), (0, 0), (y_a, y_b), (x_a, x_b)))
    Hp, Wp = padded.shape[-2], padded.shape[-1]
    return padded[:, :, y_b:Hp - y_a, x_b:Wp - x_a]


if __name__ == "__main__":
    key = jax.random.PRNGKey(0)
    B, C, H, W = 2, 4, 16, 16
    x = jax.random.normal(key, (B, C, H, W), dtype=jnp.float32)

    # Module is constructed with a static shift tuple; check several,
    # including the identity and fully-shifted-out fast paths.
    for shift in [(2, -3), (-1, 4), (0, 0), (16, 5)]:
        out = jax.block_until_ready(shift2d(x, shift))
        ref = _shift2d_ref(x, shift)
        assert out.shape == ref.shape
        assert jnp.allclose(out, ref), f"flat-path mismatch for shift={shift}"

    # Exercise the 3-D (per-plane) path with a lane-multiple width.
    x2 = jax.random.normal(jax.random.PRNGKey(1), (1, 2, 8, 128),
                           dtype=jnp.float32)
    for shift in [(3, -17), (-2, 40)]:
        out = jax.block_until_ready(shift2d(x2, shift))
        ref = _shift2d_ref(x2, shift)
        assert jnp.allclose(out, ref), f"3d-path mismatch for shift={shift}"

    print("KERNEL_OK")
</pallas_src>

<mosaic_0001>
module attributes {stable_mosaic.version = 11 : i64} {
  func.func @_shift2d_flat_kernel(%arg0: i32, %arg1: memref<1x256xi32, #tpu.memory_space<vmem>>, %arg2: memref<8x256xf32, #tpu.memory_space<vmem>>, %arg3: memref<8x256xf32, #tpu.memory_space<vmem>>) attributes {dimension_semantics = [#tpu.dimension_semantics<parallel>], iteration_bounds = array<i64: 1>, scalar_prefetch = 0 : i64, scratch_operands = 0 : i64, tpu.core_type = #tpu.core_type<tc>, window_params = [{pipeline_mode = #tpu.pipeline_mode<synchronous>, transform_indices = @transform_0, window_bounds = array<i64: 1, 256>}, {transform_indices = @transform_1, window_bounds = array<i64: 8, 256>}, {transform_indices = @transform_2, window_bounds = array<i64: 8, 256>}]} {
    %c0 = arith.constant 0 : index
    %c0_0 = arith.constant 0 : index
    %0 = vector.load %arg2[%c0, %c0_0] : memref<8x256xf32, #tpu.memory_space<vmem>>, vector<8x256xf32>
    %c29_i32 = arith.constant 29 : i32
    %1 = tpu.dynamic_rotate %0 by %c29_i32 dim 1 : vector<8x256xf32>, i32 -> vector<8x256xf32>
    %c0_1 = arith.constant 0 : index
    %c0_2 = arith.constant 0 : index
    %2 = vector.load %arg1[%c0_1, %c0_2] : memref<1x256xi32, #tpu.memory_space<vmem>>, vector<1x256xi32>
    %c0_i32 = arith.constant 0 : i32
    %3 = vector.broadcast %c0_i32 : i32 to vector<1x256xi32>
    %4 = arith.cmpi ne, %2, %3 : vector<1x256xi32>
    %cst = arith.constant 0.000000e+00 : f32
    %5 = vector.shape_cast %4 : vector<1x256xi1> to vector<1x256xi1>
    %6 = vector.broadcast %5 : vector<1x256xi1> to vector<8x256xi1>
    %7 = vector.broadcast %cst : f32 to vector<8x256xf32>
    %8 = arith.select %6, %1, %7 : vector<8x256xi1>, vector<8x256xf32>
    %c0_3 = arith.constant 0 : index
    %c0_4 = arith.constant 0 : index
    %9 = vector.load %arg3[%c0_3, %c0_4] : memref<8x256xf32, #tpu.memory_space<vmem>>, vector<8x256xf32>
    tpu.vector_store %arg3[%c0_3, %c0_4], %8 {strides = array<i32>} : memref<8x256xf32, #tpu.memory_space<vmem>>, vector<8x256xf32>,
    return
  }
  func.func @transform_0(%arg0: i32) -> (i32, i32) {
    %c0_i32 = arith.constant 0 : i32
    %c0_i32_0 = arith.constant 0 : i32
    %c0_i32_1 = arith.constant 0 : i32
    return %c0_i32, %c0_i32_0 : i32, i32
  }
  func.func @transform_1(%arg0: i32) -> (i32, i32) {
    %c0_i32 = arith.constant 0 : i32
    %c0_i32_0 = arith.constant 0 : i32
    return %arg0, %c0_i32 : i32, i32
  }
  func.func @transform_2(%arg0: i32) -> (i32, i32) {
    %c0_i32 = arith.constant 0 : i32
    %c0_i32_0 = arith.constant 0 : i32
    return %arg0, %c0_i32 : i32, i32
  }
}

</mosaic_0001>

<bundles_post_ra>
// kernel: tpu_custom_call.1
= control target key start
LH: loop header
LB: loop body
LE: loop exit
PB: predicated region body
PF: predicated region fallthrough
CT: control target
= control target key end

     0   :  { %7 = vsyncpa [#allocation3], 0  ;;  %s213_s0 = inlined_call_operand.hbm [shape: s32[1,256], index: 0, kind: input, shape index: {}]   ;;  %s214_s1 = inlined_call_operand.hbm [shape: f32[8,256], index: 1, kind: input, shape index: {}]   ;;  %s215_s2 = inlined_call_operand.hbm [shape: f32[8,256], index: 2, kind: output, shape index: {}]  }
   0x1   :  { %8 = vsyncpa [#allocation6], 0 }
   0x2   :  { %9 = vsyncpa [#allocation4], 0  ;;  %s157_s9 = smov [#allocation2]   ;;  %s158_s11 = smov [#allocation5]  }
   0x3   :  { %s16_s10 = sshll.u32 %s157_s9, 4  ;;  %s26_s12 = sshll.u32 %s158_s11, 4  ;;  %s17_s10 = int_to_ptr.vmem [resolvable:$true] %s16_s10  ;;  %s27_s12 = int_to_ptr.vmem [resolvable:$true] %s26_s12 }
   0x4   :  { %s85_s15 = scalar_lea.hbm %s213_s0, 32 }
   0x5   :  { %p86_p0 = scmp.ne.s32.totalorder %s213_s0, %s85_s15  ;;  %p89_p1 = scmp.lt.u32.totalorder %s85_s15, %s213_s0 }
   0x7   :  { %p91_p2 = pnand %p89_p1, %p86_p0 }
   0x9   :  { %94 = shalt.err (!%p91_p2)
}
   0xa   :  { %s95_s20 = scalar_lea.vmem %s17_s10, 32  ;;  %p100_p4 = scmp.lt.s32.totalorder %s17_s10, %s17_s10 }
   0xb   :  { %p96_p3 = scmp.ne.s32.totalorder %s17_s10, %s95_s20  ;;  %p101_p5 = scmp.lt.s32.totalorder %s95_s20, %s95_s20 }
   0xd   :  { %p102_p6 = por %p101_p5, %p100_p4 }
   0xf   :  { %p103_p7 = pnand %p102_p6, %p96_p3 }
  0x11   :  { %106 = shalt.err (!%p103_p7)
}
  0x12   :  { %19 = dma.hbm_to_vmem [thread:$0]  %s213_s0, 32, %s17_s10, [#allocation3]  }
  0x13   :  { %s107_s25 = scalar_lea.hbm %s214_s1, 256 }
  0x14   :  { %p108_p8 = scmp.ne.s32.totalorder %s214_s1, %s107_s25  ;;  %p111_p9 = scmp.lt.u32.totalorder %s107_s25, %s214_s1 }
  0x16   :  { %p113_p10 = pnand %p111_p9, %p108_p8 }
  0x18   :  { %116 = shalt.err (!%p113_p10)
}
  0x19   :  { %s117_s30 = scalar_lea.vmem %s27_s12, 256  ;;  %p122_p12 = scmp.lt.s32.totalorder %s27_s12, %s27_s12 }
  0x1a   :  { %p118_p11 = scmp.ne.s32.totalorder %s27_s12, %s117_s30  ;;  %p123_p13 = scmp.lt.s32.totalorder %s117_s30, %s117_s30 }
  0x1c   :  { %p124_p0 = por %p123_p13, %p122_p12 }
  0x1e   :  { %p125_p1 = pnand %p124_p0, %p118_p11 }
  0x20   :  { %128 = shalt.err (!%p125_p1)
}
  0x21   :  { %29 = dma.hbm_to_vmem [thread:$0]  %s214_s1, 256, %s27_s12, [#allocation6]  }
  0x22   :  { %151 = dma.done.wait [#allocation3], 32  }
  0x23   :  { %152 = vsyncadd [#allocation3], 4294967264 }
  0x24   :  { %153 = dma.done.wait [#allocation6], 256  }
  0x25   :  { %154 = vsyncadd [#allocation6], 4294967040  ;;  %v36_v0 = vld [vmem:[#allocation5] sm:$0xff]  ;;  %s159_s4 = smov 29   ;;  %v37_v1 = vld [vmem:[#allocation5 + $0x8] sm:$0xff]  ;;  %v42_v2 = vlaneseq  ;;  %v160_v7 = vmov 0  }
  0x26   :  { %38 = vrot.lane.b32.xlu0 %v36_v0, %s159_s4  ;;  %v47_v3 = vld [vmem:[#allocation2] sm:$0x3]  ;;  %s161_s1 = smov [#allocation7]  }
  0x27   :  { %v51_v4 = vshrl.u32 %v42_v2, 7  ;;  %vm48_vm0 = vcmp.ne.s32.totalorder %v47_v3, 0  ;;  %v43_v9 = vand.u32 127, %v42_v2  ;;  %s70_s5 = sshll.u32 %s161_s1, 4  ;;  %s71_s5 = int_to_ptr.vmem [resolvable:$true] %s70_s5 }
  0x28   :  { %v49_v8 = vsel %vm48_vm0, 1, %v160_v7  ;;  %s129_s6 = scalar_lea.vmem %s71_s5, 256  ;;  %p134_p3 = scmp.lt.s32.totalorder %s71_s5, %s71_s5 }
  0x29   :  { %v52_v5 = vsub.s32 0, %v51_v4  ;;  %v56_v6 = vsub.s32 1, %v51_v4  ;;  %vm44_vm1 = vcmp.lt.s32.totalorder %v43_v9, 29  ;;  %p130_p2 = scmp.ne.s32.totalorder %s71_s5, %s129_s6  ;;  %p135_p4 = scmp.lt.s32.totalorder %s129_s6, %s129_s6 }
  0x2a   :  { %40 = vrot.lane.b32.xlu0 %v37_v1, %s159_s4 }
  0x2b   :  { %v53_v10 = vrot.slane %v49_v8, %v52_v5  ;;  %v57_v11 = vrot.slane %v49_v8, %v56_v6  ;;  %p136_p5 = por %p135_p4, %p134_p3 }
  0x2d   :  { %vm58_vm2 = vcmp.eq.s32.totalorder %v53_v10, 1  ;;  %vm59_vm3 = vcmp.eq.s32.totalorder %v57_v11, 1  ;;  %p137_p6 = pnand %p136_p5, %p130_p2 }
  0x98   :  { %v39_v12 = vpop.permute.xlu0 %38 }
  0x9c   :  { %v41_v13 = vpop.permute.xlu0 %40 }
  0x9d   :  { %v45_v14 = vsel %vm44_vm1, %v39_v12, %v41_v13  ;;  %v46_v15 = vsel %vm44_vm1, %v41_v13, %v39_v12 }
  0x9e   :  { %v60_v16 = vsel %vm58_vm2, %v46_v15, 0.0  ;;  %v61_v17 = vsel %vm59_vm3, %v45_v14, 0.0 }
  0x9f   :  { %62 = vst [vmem:[#allocation7] sm:$0xff] %v60_v16  ;;  %63 = vst [vmem:[#allocation7 + $0x8] sm:$0xff] %v61_v17 }
  0xa0   :  { %140 = shalt.err (!%p137_p6)
}
  0xa1   :  { %s141_s9 = scalar_lea.hbm %s215_s2, 256 }
  0xa2   :  { %p142_p7 = scmp.ne.s32.totalorder %s215_s2, %s141_s9  ;;  %p145_p8 = scmp.lt.u32.totalorder %s141_s9, %s215_s2 }
  0xa4   :  { %p147_p9 = pnand %p145_p8, %p142_p7 }
  0xa6   :  { %150 = shalt.err (!%p147_p9)
}
  0xa7   :  { %73 = dma.vmem_to_hbm [thread:$0]  %s71_s5, 256, %s215_s2, [#allocation4]  }
  0xa8   :  { %155 = dma.done.wait [#allocation4], 256  }
  0xa9   :  { %156 = vsyncadd [#allocation4], 4294967040 }
  0xaa   :  { %77 = vsyncpa [#allocation3], 1 }
  0xab   :  { %78 = vsyncpa [#allocation6], 1 }
  0xac   :  { %79 = vsyncpa [#allocation4], 1 }

</bundles_post_ra>
